<compile_context>
chip_gen: v5e
topology: v5e:2x2
jax: 0.10.0
libtpu: 0.0.40
codegen_flags: <defaults>
</compile_context>

<pallas_src>
import functools

import jax
import jax.numpy as jnp
from jax.experimental import pallas as pl
from jax.experimental.pallas import tpu as pltpu

LANE = 128


def _round_up(x, m):
    return ((x + m - 1) // m) * m


def _silu(x):
    # sigmoid = 1 / (1 + exp(-x)); exp and approximate reciprocal both land on
    # the EUP slot, keeping the VALU free for the mul/add work.
    return x * pl.reciprocal(1.0 + jnp.exp(-x), approx=True)


def residual_block_kernel(x_ref, wxp_ref, bxp_ref, w1_ref, b1_ref,
                          w2_ref, b2_ref, o_ref, *, n_proj):
    x = x_ref[...]

    # One fused MXU pass for both x-consuming matmuls:
    #   columns [:n_proj]  -> projection  p (lane-dense, tile-aligned slice)
    #   columns [n_proj:]  -> hidden-layer-0 pre-activation
    slab = jnp.dot(x, wxp_ref[...],
                   preferred_element_type=jnp.float32) + bxp_ref[...]
    p = slab[:, :n_proj]                      # projection (no activation)
    h = _silu(slab[:, n_proj:])               # hidden layer 0 + SiLU

    # hidden layer 1: Linear(n_units, n_units) + SiLU   (residual_depth = 2)
    h = _silu(jnp.dot(h.astype(w1_ref.dtype), w1_ref[...],
                      preferred_element_type=jnp.float32) + b1_ref[...])

    # output head of the stack (lane-padded to n_proj columns), no activation
    r = jnp.dot(h.astype(w2_ref.dtype), w2_ref[...],
                preferred_element_type=jnp.float32) + b2_ref[...]

    o_ref[...] = _silu(r + p).astype(o_ref.dtype)


def residual_block_forward(x, params, *, tile_batch=256,
                           compute_dtype=jnp.float32):
    """x: (batch, n_input) f32. params: transposed (in, out) weights, (1, n) biases."""
    batch, n_input = x.shape
    n_units = params["w1"].shape[0]
    n_out = params["w2"].shape[1]
    n_proj = _round_up(n_out, LANE)           # lane-dense output width
    f32 = jnp.float32

    # ---- wrapper-side packing (cheap; fuse under jit in production) ----------
    # zero-pad output-producing weights/biases to the lane-dense width.
    w2p = jnp.zeros((n_units, n_proj), f32).at[:, :n_out].set(params["w2"])
    b2p = jnp.zeros((1, n_proj), f32).at[:, :n_out].set(params["b2"])
    wpp = jnp.zeros((n_input, n_proj), f32).at[:, :n_out].set(params["wp"])
    bpp = jnp.zeros((1, n_proj), f32).at[:, :n_out].set(params["bp"])
    # fuse the two x-consuming matmuls: x @ [Wp_pad | W0]
    wxp = jnp.concatenate([wpp, params["w0"]], axis=1)   # (n_input, n_proj+n_units)
    bxp = jnp.concatenate([bpp, params["b0"]], axis=1)   # (1, n_proj+n_units)

    # cast MXU operands (bf16 recommended on v6e/v7x); biases / accum stay f32.
    xc = x.astype(compute_dtype)
    wxp = wxp.astype(compute_dtype)
    w1 = params["w1"].astype(compute_dtype)
    w2p = w2p.astype(compute_dtype)
    b1 = params["b1"].astype(f32)
    bxp = bxp.astype(f32)
    b2p = b2p.astype(f32)

    # ---- batch tiling: grid over batch, weights VMEM-resident -----------------
    tb = _round_up(min(tile_batch, _round_up(batch, 8)), 8)
    padded_batch = _round_up(batch, tb)
    if padded_batch != batch:
        xc = jnp.zeros((padded_batch, n_input), compute_dtype).at[:batch].set(xc)
    grid = (padded_batch // tb,)

    resident = lambda i: (0, 0)               # constant block index -> DMA'd once
    out = pl.pallas_call(
        functools.partial(residual_block_kernel, n_proj=n_proj),
        out_shape=jax.ShapeDtypeStruct((padded_batch, n_proj), jnp.float32),
        grid=grid,
        in_specs=[
            pl.BlockSpec((tb, n_input), lambda i: (i, 0)),   # x tile
            pl.BlockSpec(wxp.shape, resident),
            pl.BlockSpec(bxp.shape, resident),
            pl.BlockSpec(w1.shape, resident),
            pl.BlockSpec(b1.shape, resident),
            pl.BlockSpec(w2p.shape, resident),
            pl.BlockSpec(b2p.shape, resident),
        ],
        out_specs=pl.BlockSpec((tb, n_proj), lambda i: (i, 0)),
        compiler_params=pltpu.CompilerParams(
            dimension_semantics=("parallel",)),   # v7x megacore; no-op on v5e/v6e
    )(xc, wxp, bxp, w1, b1, w2p, b2p)

    return out[:batch, :n_out]


# ---------------------------- pure-JAX reference -------------------------------
def _silu_ref(x):
    return x * jax.nn.sigmoid(x)


def _reference_forward(x, params):
    h = _silu_ref(x @ params["w0"] + params["b0"])
    h = _silu_ref(h @ params["w1"] + params["b1"])
    r = h @ params["w2"] + params["b2"]
    p = x @ params["wp"] + params["bp"]
    return _silu_ref(r + p)


def make_params(key, n_input, n_units, n_out):
    ks = jax.random.split(key, 8)
    scale = 0.1
    return {
        # weights stored as (in_features, out_features) == torch_weight.T
        "w0": scale * jax.random.normal(ks[0], (n_input, n_units), jnp.float32),
        "b0": scale * jax.random.normal(ks[1], (1, n_units), jnp.float32),
        "w1": scale * jax.random.normal(ks[2], (n_units, n_units), jnp.float32),
        "b1": scale * jax.random.normal(ks[3], (1, n_units), jnp.float32),
        "w2": scale * jax.random.normal(ks[4], (n_units, n_out), jnp.float32),
        "b2": scale * jax.random.normal(ks[5], (1, n_out), jnp.float32),
        "wp": scale * jax.random.normal(ks[6], (n_input, n_out), jnp.float32),
        "bp": scale * jax.random.normal(ks[7], (1, n_out), jnp.float32),
    }


if __name__ == "__main__":
    # TorchResidualBlock(n_input=16, n_out=8, residual_depth=2, n_units=32)
    batch, n_input, n_units, n_out = 8, 16, 32, 8

    key = jax.random.PRNGKey(0)
    kx, kp = jax.random.split(key)
    x = jax.random.normal(kx, (batch, n_input), jnp.float32)
    params = make_params(kp, n_input, n_units, n_out)

    ref = _reference_forward(x, params)

    # f32 operand path
    out = jax.block_until_ready(residual_block_forward(x, params))
    assert out.shape == (batch, n_out), out.shape
    assert jnp.allclose(out, ref, atol=5e-3, rtol=5e-3), "mismatch vs JAX reference (f32)"

    # bf16 operand path (v6e/v7x: half the DMA bytes, full-rate bf16 MXU, f32 accum)
    out_bf16 = jax.block_until_ready(
        residual_block_forward(x, params, compute_dtype=jnp.bfloat16))
    assert out_bf16.shape == (batch, n_out), out_bf16.shape
    assert jnp.allclose(out_bf16, ref, atol=5e-2, rtol=5e-2), "mismatch vs JAX reference (bf16)"

    print("KERNEL_OK")
</pallas_src>

<mosaic_0001>
module attributes {stable_mosaic.version = 11 : i64} {
  func.func @residual_block_kernel(%arg0: i32, %arg1: memref<8x16xf32, #tpu.memory_space<vmem>>, %arg2: memref<16x160xf32, #tpu.memory_space<vmem>>, %arg3: memref<1x160xf32, #tpu.memory_space<vmem>>, %arg4: memref<32x32xf32, #tpu.memory_space<vmem>>, %arg5: memref<1x32xf32, #tpu.memory_space<vmem>>, %arg6: memref<32x128xf32, #tpu.memory_space<vmem>>, %arg7: memref<1x128xf32, #tpu.memory_space<vmem>>, %arg8: memref<8x128xf32, #tpu.memory_space<vmem>>) attributes {dimension_semantics = [#tpu.dimension_semantics<parallel>], iteration_bounds = array<i64: 1>, scalar_prefetch = 0 : i64, scratch_operands = 0 : i64, tpu.core_type = #tpu.core_type<tc>, window_params = [{transform_indices = @transform_0, window_bounds = array<i64: 8, 16>}, {pipeline_mode = #tpu.pipeline_mode<synchronous>, transform_indices = @transform_1, window_bounds = array<i64: 16, 160>}, {pipeline_mode = #tpu.pipeline_mode<synchronous>, transform_indices = @transform_2, window_bounds = array<i64: 1, 160>}, {pipeline_mode = #tpu.pipeline_mode<synchronous>, transform_indices = @transform_3, window_bounds = array<i64: 32, 32>}, {pipeline_mode = #tpu.pipeline_mode<synchronous>, transform_indices = @transform_4, window_bounds = array<i64: 1, 32>}, {pipeline_mode = #tpu.pipeline_mode<synchronous>, transform_indices = @transform_5, window_bounds = array<i64: 32, 128>}, {pipeline_mode = #tpu.pipeline_mode<synchronous>, transform_indices = @transform_6, window_bounds = array<i64: 1, 128>}, {transform_indices = @transform_7, window_bounds = array<i64: 8, 128>}]} {
    %c0 = arith.constant 0 : index
    %c0_0 = arith.constant 0 : index
    %0 = vector.load %arg1[%c0, %c0_0] : memref<8x16xf32, #tpu.memory_space<vmem>>, vector<8x16xf32>
    %c0_1 = arith.constant 0 : index
    %c0_2 = arith.constant 0 : index
    %1 = vector.load %arg2[%c0_1, %c0_2] : memref<16x160xf32, #tpu.memory_space<vmem>>, vector<16x160xf32>
    %cst = arith.constant dense<0.000000e+00> : vector<8x160xf32>
    %2 = tpu.matmul %0, %1, %cst {dimension_numbers = #tpu.dot_dimension_numbers<[1], [0], [0], [1], [0, 0, 1, 1], [], []>} : vector<8x16xf32>, vector<16x160xf32>, vector<8x160xf32> -> vector<8x160xf32>
    %c0_3 = arith.constant 0 : index
    %c0_4 = arith.constant 0 : index
    %3 = vector.load %arg3[%c0_3, %c0_4] : memref<1x160xf32, #tpu.memory_space<vmem>>, vector<1x160xf32>
    %4 = vector.broadcast %3 : vector<1x160xf32> to vector<8x160xf32>
    %5 = arith.addf %2, %4 : vector<8x160xf32>
    %6 = vector.extract_strided_slice %5 {offsets = [0, 0], sizes = [8, 128], strides = [1, 1]} : vector<8x160xf32> to vector<8x128xf32>
    %7 = vector.extract_strided_slice %5 {offsets = [0, 128], sizes = [8, 32], strides = [1, 1]} : vector<8x160xf32> to vector<8x32xf32>
    %cst_5 = arith.constant 0.000000e+00 : f32
    %8 = vector.broadcast %cst_5 : f32 to vector<8x32xf32>
    %9 = arith.subf %8, %7 : vector<8x32xf32>
    %10 = math.exp %9 : vector<8x32xf32>
    %cst_6 = arith.constant 1.000000e+00 : f32
    %11 = vector.broadcast %cst_6 : f32 to vector<8x32xf32>
    %12 = arith.addf %11, %10 : vector<8x32xf32>
    %13 = tpu.reciprocal %12 {approx = true} : vector<8x32xf32> -> vector<8x32xf32>
    %14 = arith.mulf %7, %13 : vector<8x32xf32>
    %c0_7 = arith.constant 0 : index
    %c0_8 = arith.constant 0 : index
    %15 = vector.load %arg4[%c0_7, %c0_8] : memref<32x32xf32, #tpu.memory_space<vmem>>, vector<32x32xf32>
    %cst_9 = arith.constant dense<0.000000e+00> : vector<8x32xf32>
    %16 = tpu.matmul %14, %15, %cst_9 {dimension_numbers = #tpu.dot_dimension_numbers<[1], [0], [0], [1], [0, 0, 1, 1], [], []>} : vector<8x32xf32>, vector<32x32xf32>, vector<8x32xf32> -> vector<8x32xf32>
    %c0_10 = arith.constant 0 : index
    %c0_11 = arith.constant 0 : index
    %17 = vector.load %arg5[%c0_10, %c0_11] : memref<1x32xf32, #tpu.memory_space<vmem>>, vector<1x32xf32>
    %18 = vector.broadcast %17 : vector<1x32xf32> to vector<8x32xf32>
    %19 = arith.addf %16, %18 : vector<8x32xf32>
    %cst_12 = arith.constant 0.000000e+00 : f32
    %20 = vector.broadcast %cst_12 : f32 to vector<8x32xf32>
    %21 = arith.subf %20, %19 : vector<8x32xf32>
    %22 = math.exp %21 : vector<8x32xf32>
    %cst_13 = arith.constant 1.000000e+00 : f32
    %23 = vector.broadcast %cst_13 : f32 to vector<8x32xf32>
    %24 = arith.addf %23, %22 : vector<8x32xf32>
    %25 = tpu.reciprocal %24 {approx = true} : vector<8x32xf32> -> vector<8x32xf32>
    %26 = arith.mulf %19, %25 : vector<8x32xf32>
    %c0_14 = arith.constant 0 : index
    %c0_15 = arith.constant 0 : index
    %27 = vector.load %arg6[%c0_14, %c0_15] : memref<32x128xf32, #tpu.memory_space<vmem>>, vector<32x128xf32>
    %cst_16 = arith.constant dense<0.000000e+00> : vector<8x128xf32>
    %28 = tpu.matmul %26, %27, %cst_16 {dimension_numbers = #tpu.dot_dimension_numbers<[1], [0], [0], [1], [0, 0, 1, 1], [], []>} : vector<8x32xf32>, vector<32x128xf32>, vector<8x128xf32> -> vector<8x128xf32>
    %c0_17 = arith.constant 0 : index
    %c0_18 = arith.constant 0 : index
    %29 = vector.load %arg7[%c0_17, %c0_18] : memref<1x128xf32, #tpu.memory_space<vmem>>, vector<1x128xf32>
    %30 = vector.broadcast %29 : vector<1x128xf32> to vector<8x128xf32>
    %31 = arith.addf %28, %30 : vector<8x128xf32>
    %32 = arith.addf %31, %6 : vector<8x128xf32>
    %cst_19 = arith.constant 0.000000e+00 : f32
    %33 = vector.broadcast %cst_19 : f32 to vector<8x128xf32>
    %34 = arith.subf %33, %32 : vector<8x128xf32>
    %35 = math.exp %34 : vector<8x128xf32>
    %cst_20 = arith.constant 1.000000e+00 : f32
    %36 = vector.broadcast %cst_20 : f32 to vector<8x128xf32>
    %37 = arith.addf %36, %35 : vector<8x128xf32>
    %38 = tpu.reciprocal %37 {approx = true} : vector<8x128xf32> -> vector<8x128xf32>
    %39 = arith.mulf %32, %38 : vector<8x128xf32>
    %c0_21 = arith.constant 0 : index
    %c0_22 = arith.constant 0 : index
    %40 = vector.load %arg8[%c0_21, %c0_22] : memref<8x128xf32, #tpu.memory_space<vmem>>, vector<8x128xf32>
    tpu.vector_store %arg8[%c0_21, %c0_22], %39 {strides = array<i32>} : memref<8x128xf32, #tpu.memory_space<vmem>>, vector<8x128xf32>,
    return
  }
  func.func @transform_0(%arg0: i32) -> (i32, i32) {
    %c0_i32 = arith.constant 0 : i32
    %c0_i32_0 = arith.constant 0 : i32
    return %arg0, %c0_i32 : i32, i32
  }
  func.func @transform_1(%arg0: i32) -> (i32, i32) {
    %c0_i32 = arith.constant 0 : i32
    %c0_i32_0 = arith.constant 0 : i32
    %c0_i32_1 = arith.constant 0 : i32
    return %c0_i32, %c0_i32_0 : i32, i32
  }
  func.func @transform_2(%arg0: i32) -> (i32, i32) {
    %c0_i32 = arith.constant 0 : i32
    %c0_i32_0 = arith.constant 0 : i32
    %c0_i32_1 = arith.constant 0 : i32
    return %c0_i32, %c0_i32_0 : i32, i32
  }
  func.func @transform_3(%arg0: i32) -> (i32, i32) {
    %c0_i32 = arith.constant 0 : i32
    %c0_i32_0 = arith.constant 0 : i32
    %c0_i32_1 = arith.constant 0 : i32
    return %c0_i32, %c0_i32_0 : i32, i32
  }
  func.func @transform_4(%arg0: i32) -> (i32, i32) {
    %c0_i32 = arith.constant 0 : i32
    %c0_i32_0 = arith.constant 0 : i32
    %c0_i32_1 = arith.constant 0 : i32
    return %c0_i32, %c0_i32_0 : i32, i32
  }
  func.func @transform_5(%arg0: i32) -> (i32, i32) {
    %c0_i32 = arith.constant 0 : i32
    %c0_i32_0 = arith.constant 0 : i32
    %c0_i32_1 = arith.constant 0 : i32
    return %c0_i32, %c0_i32_0 : i32, i32
  }
  func.func @transform_6(%arg0: i32) -> (i32, i32) {
    %c0_i32 = arith.constant 0 : i32
    %c0_i32_0 = arith.constant 0 : i32
    %c0_i32_1 = arith.constant 0 : i32
    return %c0_i32, %c0_i32_0 : i32, i32
  }
  func.func @transform_7(%arg0: i32) -> (i32, i32) {
    %c0_i32 = arith.constant 0 : i32
    %c0_i32_0 = arith.constant 0 : i32
    return %arg0, %c0_i32 : i32, i32
  }
}

</mosaic_0001>

<bundles_post_ra>
// kernel: tpu_custom_call.1
= control target key start
LH: loop header
LB: loop body
LE: loop exit
PB: predicated region body
PF: predicated region fallthrough
CT: control target
= control target key end

     0   :  { %12 = vsyncpa [#allocation3], 0  ;;  %s516_s0 = inlined_call_operand.hbm [shape: f32[8,16], index: 0, kind: input, shape index: {}]   ;;  %s517_s1 = inlined_call_operand.hbm [shape: f32[16,160], index: 1, kind: input, shape index: {}]   ;;  %s518_s2 = inlined_call_operand.hbm [shape: f32[1,160], index: 2, kind: input, shape index: {}]   ;;  %s519_s3 = inlined_call_operand.hbm [shape: f32[32,32], index: 3, kind: input, shape index: {}]   ;;  %s520_s4 = inlined_call_operand.vmem [shape: f32[1,32], index: 4, kind: input, shape index: {}]   ;;  %s521_s5 = inlined_call_operand.hbm [shape: f32[32,128], index: 5, kind: input, shape index: {}]   ;;  %s522_s6 = inlined_call_operand.vmem [shape: f32[1,128], index: 6, kind: input, shape index: {}]   ;;  %s523_s7 = inlined_call_operand.hbm [shape: f32[8,128], index: 7, kind: output, shape index: {}]  }
   0x1   :  { %13 = vsyncpa [#allocation6], 0 }
   0x2   :  { %14 = vsyncpa [#allocation9], 0  ;;  %s31_s26 = sshll.u32 %s517_s1, 4  ;;  %s32_s26 = int_to_ptr.hbm [resolvable:$true] %s31_s26 }
   0x3   :  { %15 = vsyncpa [#allocation4], 0  ;;  %s438_s27 = smov [#allocation5]   ;;  %s55_s8 = sshll.u32 %s519_s3, 4  ;;  %s56_s8 = int_to_ptr.hbm [resolvable:$true] %s55_s8 }
   0x4   :  { %s33_s28 = sshll.u32 %s438_s27, 4  ;;  %s439_s9 = smov 256   ;;  %s34_s28 = int_to_ptr.vmem [resolvable:$true] %s33_s28 }
   0x5   :  { %s440_s10 = smov 16   ;;  %s441_s11 = smov [#allocation8]  }
   0x6   :  { %39 = dma.hbm_to_vmem [thread:$0]  %s32_s26, 512, %s34_s28, [#allocation6], %s439_s9, %s439_s9, %s440_s10  }
   0x7   :  { %s57_s12 = sshll.u32 %s441_s11, 4  ;;  %s442_s13 = smov 128   ;;  %s58_s12 = int_to_ptr.vmem [resolvable:$true] %s57_s12 }
   0x8   :  { %s443_s14 = smov 8   ;;  %s21_s16 = sshll.u32 %s516_s0, 4  ;;  %s22_s16 = int_to_ptr.hbm [resolvable:$true] %s21_s16 }
   0x9   :  { %63 = dma.hbm_to_vmem [thread:$0]  %s56_s8, 512, %s58_s12, [#allocation9], %s442_s13, %s442_s13, %s443_s14  }
   0xa   :  { %s444_s17 = smov [#allocation2]   ;;  %s45_s20 = sshll.u32 %s518_s2, 4  ;;  %s46_s20 = int_to_ptr.hbm [resolvable:$true] %s45_s20 }
   0xb   :  { %s23_s18 = sshll.u32 %s444_s17, 4  ;;  %s445_s21 = smov [#allocation7]   ;;  %s24_s18 = int_to_ptr.vmem [resolvable:$true] %s23_s18 }
   0xc   :  { %26 = dma.hbm_to_vmem [thread:$0]  %s22_s16, 128, %s24_s18, [#allocation3]  }
   0xd   :  { %s47_s22 = sshll.u32 %s445_s21, 4  ;;  %s70_s25 = sshll.u32 %s521_s5, 4  ;;  %s48_s22 = int_to_ptr.vmem [resolvable:$true] %s47_s22  ;;  %s71_s25 = int_to_ptr.hbm [resolvable:$true] %s70_s25 }
   0xe   :  { %50 = dma.hbm_to_vmem [thread:$0]  %s46_s20, 32, %s48_s22, [#allocation6]  }
   0xf   :  { %s446_s0 = smov [#allocation10]  }
  0x10   :  { %s72_s26 = sshll.u32 %s446_s0, 4  ;;  %s73_s26 = int_to_ptr.vmem [resolvable:$true] %s72_s26 }
  0x11   :  { %78 = dma.hbm_to_vmem [thread:$0]  %s71_s25, 512, %s73_s26, [#allocation9], %s442_s13, %s442_s13, %s443_s14  }
  0x12   :  { %430 = dma.done.wait [#allocation3], 128  }
  0x13   :  { %431 = vsyncadd [#allocation3], 4294967168 }
  0x14   :  { %432 = dma.done.wait [#allocation6], 544  }
  0x15   :  { %433 = vsyncadd [#allocation6], 4294966752 }
  0x16   :  { %434 = dma.done.wait [#allocation9], 1024  }
  0x17   :  { %435 = vsyncadd [#allocation9], 4294966272  ;;  %v105_v0 = vld [vmem:[#allocation5 + $0x18] sm:$0xff]  ;;  %v103_v1 = vld [vmem:[#allocation5 + $0x8] sm:$0xff]  ;;  %vm112_vm0 = vcmask 130048   ;;  %vm170_vm1 = vcmask 261120  }
  0x18   :  { %150 = vmatpush.msra.mxu1 %v105_v0  ;;  %v101_v2 = vld [vmem:[#allocation2] sm:$0xff]  ;;  %v163_v5 = vld [vmem:[#allocation8 + $0x8] sm:$0xff]  ;;  %v162_v6 = vld [vmem:[#allocation8] sm:$0xff]  ;;  %s246_s9 = sshll.u32 %s523_s7, 4  ;;  %s247_s9 = int_to_ptr.hbm [resolvable:$true] %s246_s9 }
  0x19   :  { %v165_v3 = vld [vmem:[#allocation8 + $0x18] sm:$0xff]  ;;  %v164_v4 = vld [vmem:[#allocation8 + $0x10] sm:$0xff]  ;;  %v201_v19 = vld [vmem:[#allocation10 + $0x8] sm:$0xff] }
  0x1a   :  { %151 = vmatpush.msra.mxu1 %v103_v1  ;;  %186 = vmatpush.msra.mxu2 %v165_v3  ;;  %v106_v7 = vld [vmem:[#allocation7] sm:$0x3]  ;;  %v202_v18 = vld [vmem:[#allocation10 + $0x10] sm:$0xff]  ;;  %v200_v20 = vld [vmem:[#allocation10] sm:$0xff] }
  0x1b   :  { %259 = vmatmul.msk.f32.vlgmr.msra.gmra.mxu1 %vm112_vm0, %v101_v2  ;;  %v109_v8 = vperm.slane %v106_v7, 1  ;;  %v203_v17 = vld [vmem:[#allocation10 + $0x18] sm:$0xff]  ;;  %v104_v21 = vld [vmem:[#allocation5 + $0x10] sm:$0xff]  ;;  %v272_v23 = vld [vmem:[%s520_s4] ss:$0 sm:$0xff]  ;;  %v108_v32 = vperm.slane %v106_v7, 0 }
  0x1c   :  { %187 = vmatpush.msra.mxu2 %v164_v4  ;;  %223 = vmatpush.msra.mxu3 %v203_v17  ;;  %v102_v22 = vld [vmem:[#allocation5] sm:$0xff]  ;;  %v273_v34 = vld [vmem:[%s522_s6] ss:$0 sm:$0xff]  ;;  %s447_s4 = smov [#allocation11]  }
  0x1d   :  { %130 = vmatpush.msra.mxu0 %v104_v21  ;;  %s244_s29 = sshll.u32 %s447_s4, 4  ;;  %s245_s29 = int_to_ptr.vmem [resolvable:$true] %s244_s29 }
  0x1e   :  { %188 = vmatpush.msra.mxu2 %v163_v5  ;;  %224 = vmatpush.msra.mxu3 %v202_v18 }
  0x1f   :  { %131 = vmatpush.msra.mxu0 %v102_v22 }
  0x20   :  { %189 = vmatpush.msra.mxu2 %v162_v6  ;;  %225 = vmatpush.msra.mxu3 %v201_v19 }
  0x21   :  { %258 = vmatmul.msk.f32.vlgmr.msra.gmra.mxu0 %vm112_vm0, %v101_v2 }
  0x22   :  { %226 = vmatpush.msra.mxu3 %v200_v20 }
  0x98   :  { %v153_v9 = vpop.f32.mrf.mxu1 }
  0x99   :  { %v154_v10 = vadd.f32 %v153_v9, %v109_v8 }
  0x9b   :  { %v156_v11 = vsub.f32 0.0, %v154_v10 }
  0x9d   :  { %v157_v12 = vmul.f32 1.442695, %v156_v11 }
  0x9e   :  { %v133_v33 = vpop.f32.mrf.mxu0 }
  0x9f   :  { %274 = vpow2.f32 %v157_v12  ;;  %v134_v35 = vadd.f32 %v133_v33, %v108_v32 }
  0xa5   :  { %v275_v13 = vpop.eup %274 }
  0xa6   :  { %v159_v14 = vadd.f32 1.0, %v275_v13 }
  0xa8   :  { %276 = vrcp.f32 %v159_v14 }
  0xae   :  { %v277_v15 = vpop.eup %276 }
  0xaf   :  { %v161_v16 = vmul.f32 %v277_v15, %v154_v10 }
  0xb1   :  { %260 = vmatmul.msk.f32.vlgmr.msra.gmra.mxu2 %vm170_vm1, %v161_v16 }
 0x134   :  { %v191_v24 = vpop.f32.mrf.mxu2 }
 0x135   :  { %v192_v25 = vadd.f32 %v272_v23, %v191_v24 }
 0x137   :  { %v194_v26 = vsub.f32 0.0, %v192_v25 }
 0x139   :  { %v195_v27 = vmul.f32 1.442695, %v194_v26 }
 0x13b   :  { %278 = vpow2.f32 %v195_v27 }
 0x141   :  { %v279_v28 = vpop.eup %278 }
 0x142   :  { %v197_v29 = vadd.f32 1.0, %v279_v28 }
 0x144   :  { %280 = vrcp.f32 %v197_v29 }
 0x14a   :  { %v281_v30 = vpop.eup %280 }
 0x14b   :  { %v199_v31 = vmul.f32 %v281_v30, %v192_v25 }
 0x14d   :  { %261 = vmatmul.msk.f32.vlgmr.msra.gmra.mxu3 %vm170_vm1, %v199_v31 }
 0x1d0   :  { %v228_v36 = vpop.f32.mrf.mxu3 }
 0x1d1   :  { %v229_v37 = vadd.f32 %v273_v34, %v228_v36 }
 0x1d3   :  { %v231_v38 = vadd.f32 %v229_v37, %v134_v35 }
 0x1d5   :  { %v232_v39 = vsub.f32 0.0, %v231_v38 }
 0x1d7   :  { %v233_v40 = vmul.f32 1.442695, %v232_v39 }
 0x1d9   :  { %282 = vpow2.f32 %v233_v40 }
 0x1df   :  { %v283_v41 = vpop.eup %282 }
 0x1e0   :  { %v235_v42 = vadd.f32 1.0, %v283_v41 }
 0x1e2   :  { %284 = vrcp.f32 %v235_v42 }
 0x1e8   :  { %v285_v43 = vpop.eup %284 }
 0x1e9   :  { %v237_v44 = vmul.f32 %v285_v43, %v231_v38 }
 0x1eb   :  { %238 = vst [vmem:[#allocation11] sm:$0xff] %v237_v44 }
 0x1ec   :  { %249 = dma.vmem_to_hbm [thread:$0]  %s245_s29, 128, %s247_s9, [#allocation4]  }
 0x1ed   :  { %436 = dma.done.wait [#allocation4], 128  }
 0x1ee   :  { %437 = vsyncadd [#allocation4], 4294967168 }
 0x1ef   :  { %254 = vsyncpa [#allocation3], 1 }
 0x1f0   :  { %255 = vsyncpa [#allocation6], 1 }
 0x1f1   :  { %256 = vsyncpa [#allocation9], 1 }
 0x1f2   :  { %257 = vsyncpa [#allocation4], 1 }

</bundles_post_ra>
